<compile_context>
chip_gen: v5e
topology: v5e:2x2
jax: 0.10.0
libtpu: 0.0.40
codegen_flags: <defaults>
</compile_context>

<pallas_src>
import numpy as np
import jax
import jax.numpy as jnp
from jax.experimental import pallas as pl
from jax.experimental.pallas import tpu as pltpu

_GATHER_ROWS = 8            # output rows (sublanes) gathered per grid step
_SMALL_TABLE_BYTES = 2 << 20   # table <= 2 MiB -> resident-VMEM gather path
_D_TILE = 2048              # feature-dim tile for the DMA gather path


# ---------------------------------------------------------------------------
# Kernel 1: fused HBM->HBM DMA clone (forward pass materialization)
# ---------------------------------------------------------------------------
def _make_clone_kernel(n):
    def kernel(*refs):
        in_refs = refs[:n]
        out_refs = refs[n:2 * n]
        sem = refs[2 * n]
        copies = [pltpu.make_async_copy(in_refs[i], out_refs[i], sem.at[i])
                  for i in range(n)]
        for cp in copies:      # fire all buffer copies; they overlap in the DMA engines
            cp.start()
        for cp in copies:
            cp.wait()
    return kernel


def pallas_clone_all(bufs):
    """Clone every buffer in ONE pallas_call via direct HBM->HBM DMAs."""
    bufs = list(bufs)
    n = len(bufs)
    if n == 0:
        return []
    outs = pl.pallas_call(
        _make_clone_kernel(n),
        out_shape=tuple(jax.ShapeDtypeStruct(b.shape, b.dtype) for b in bufs),
        in_specs=[pl.BlockSpec(memory_space=pl.ANY)] * n,
        out_specs=tuple(pl.BlockSpec(memory_space=pl.ANY) for _ in range(n)),
        scratch_shapes=[pltpu.SemaphoreType.DMA((n,))],
        compiler_params=pltpu.CompilerParams(has_side_effects=True),
    )(*bufs)
    if not isinstance(outs, (tuple, list)):
        outs = (outs,)
    return list(outs)


# ---------------------------------------------------------------------------
# Kernel 2a: gather from a small (VMEM-resident) table
# ---------------------------------------------------------------------------
def _make_vmem_gather_kernel(n_rows, k, block_rows):
    def kernel(ids_ref, x_ref, out_ref):
        i = pl.program_id(0)
        for t in range(block_rows):
            # Clamp the tail of the final partial block (rows >= k are masked
            # off by Pallas on writeback) and clamp the index itself so a bad
            # index can never read outside the table.
            row = jnp.minimum(i * block_rows + t, k - 1)
            idx = jnp.clip(ids_ref[row], 0, n_rows - 1)
            out_ref[t, :] = x_ref[idx, :]
    return kernel


# ---------------------------------------------------------------------------
# Kernel 2b: double-buffered DMA gather from an HBM table (large tables)
# ---------------------------------------------------------------------------
def _make_dma_gather_kernel(n_rows, k, block_rows, d_tile, n_d_tiles):
    def kernel(ids_ref, x_hbm, out_ref, buf, sem):
        i = pl.program_id(0)
        j = pl.program_id(1)
        n_i = pl.num_programs(0)
        step = i * n_d_tiles + j
        last = n_i * n_d_tiles - 1
        slot = step % 2

        def issue(ib, jb, s):
            col = pl.multiple_of(jb * d_tile, d_tile)
            for t in range(block_rows):
                row = jnp.minimum(ib * block_rows + t, k - 1)
                src = jnp.clip(ids_ref[row], 0, n_rows - 1)
                pltpu.make_async_copy(
                    x_hbm.at[src, pl.ds(col, d_tile)],
                    buf.at[s, t],
                    sem.at[s, t],
                ).start()

        @pl.when(step == 0)
        def _():
            issue(i, j, slot)                # prime slot 0

        # Wait for this step's row DMAs.
        for t in range(block_rows):
            pltpu.make_async_copy(
                x_hbm.at[0, pl.ds(0, d_tile)],
                buf.at[slot, t],
                sem.at[slot, t],
            ).wait()

        # Prefetch the next step's rows into the other slot (overlaps with the
        # output store / writeback below).
        @pl.when(step < last)
        def _():
            nxt = step + 1
            ni = nxt // n_d_tiles
            nj = nxt % n_d_tiles
            issue(ni, nj, 1 - slot)

        out_ref[...] = buf[slot]
    return kernel


def pallas_index_rows(x, inds, *, small_table_bytes=_SMALL_TABLE_BYTES,
                      d_tile=_D_TILE):
    """Equivalent of torch `x[inds].clone()` for an integer index vector."""
    n = int(x.shape[0])
    rest = tuple(x.shape[1:])
    d = int(np.prod(rest)) if rest else 1
    x2 = x.reshape(n, d)

    ids = jnp.asarray(inds, dtype=jnp.int32).reshape(-1)
    k = int(ids.shape[0])
    b = _GATHER_ROWS
    itemsize = np.dtype(x.dtype).itemsize
    grid_rows = pl.cdiv(k, b)

    if n * d * itemsize <= small_table_bytes:
        # Small-table fast path: table resident in VMEM, one sublane-full
        # (b, d) output tile per grid step, no index padding / output slice.
        out = pl.pallas_call(
            _make_vmem_gather_kernel(n, k, b),
            out_shape=jax.ShapeDtypeStruct((k, d), x.dtype),
            grid_spec=pltpu.PrefetchScalarGridSpec(
                num_scalar_prefetch=1,
                grid=(grid_rows,),
                in_specs=[pl.BlockSpec((n, d), lambda i, ids_ref: (0, 0))],
                out_specs=pl.BlockSpec((b, d), lambda i, ids_ref: (i, 0)),
            ),
            compiler_params=pltpu.CompilerParams(
                dimension_semantics=("parallel",)),
        )(ids, x2)
    else:
        # Large-table path: single pl.ANY input, manual double-buffered DMA
        # row gather, feature dim tiled so per-step VMEM stays bounded.
        if d > d_tile and d % d_tile == 0:
            dt = d_tile
        else:
            dt = d   # TODO(synk): ragged feature-dim tiling (d % d_tile != 0)
        n_d_tiles = d // dt
        out = pl.pallas_call(
            _make_dma_gather_kernel(n, k, b, dt, n_d_tiles),
            out_shape=jax.ShapeDtypeStruct((k, d), x.dtype),
            grid_spec=pltpu.PrefetchScalarGridSpec(
                num_scalar_prefetch=1,
                grid=(grid_rows, n_d_tiles),
                in_specs=[pl.BlockSpec(memory_space=pl.ANY)],
                out_specs=pl.BlockSpec((b, dt), lambda i, j, ids_ref: (i, j)),
                scratch_shapes=[
                    pltpu.VMEM((2, b, dt), x.dtype),
                    pltpu.SemaphoreType.DMA((2, b)),
                ],
            ),
            compiler_params=pltpu.CompilerParams(
                dimension_semantics=("arbitrary", "arbitrary"),
                has_side_effects=True),
        )(ids, x2)
    return out.reshape((k,) + rest)


# ---------------------------------------------------------------------------
# TensorDict module (JAX version)
# ---------------------------------------------------------------------------
class TensorDict:
    """A module that returns a dict of tensors (Pallas-backed)."""

    def __init__(self, names, tensors):
        self.names = list(names)
        self._buffers = dict(zip(self.names, tensors))

    def add(self, key, tensor):
        self._buffers[key] = tensor
        self.names.append(key)

    def __call__(self, *args, **kwargs):
        if not self.names:
            return {}
        bufs = [self._buffers[key] for key in self.names]
        outs = pallas_clone_all(bufs)   # one fused HBM->HBM DMA call
        return dict(zip(self.names, outs))

    forward = __call__

    def indexing(self, inds):
        # Gather directly from the raw buffers: the gather kernel already
        # materializes a fresh copy, so no preceding clone pass is needed.
        return TensorDict(
            list(self.names),
            [pallas_index_rows(self._buffers[key], inds) for key in self.names],
        )


# ---------------------------------------------------------------------------
# Demo / self-test
# ---------------------------------------------------------------------------
if __name__ == "__main__":
    key = jax.random.PRNGKey(0)
    k1, k2, k3, k4 = jax.random.split(key, 4)

    # Deterministic synthetic buffers (shared leading axis so indexing() works
    # the same way it does in the PyTorch module).  layout: "x" is NCHW.
    x = jax.random.normal(k1, (4, 2, 16, 16), dtype=jnp.float32)   # NCHW
    w = jax.random.normal(k2, (4, 32), dtype=jnp.float32)
    b = jax.random.normal(k3, (4, 8, 8), dtype=jnp.float32)

    td = TensorDict(["x", "w"], [x, w])
    td.add("b", b)

    # forward pass: one fused HBM->HBM DMA clone of all buffers
    out = td()
    jax.block_until_ready(out)
    assert set(out.keys()) == {"x", "w", "b"}
    np.testing.assert_allclose(np.asarray(out["x"]), np.asarray(x), rtol=0, atol=0)
    np.testing.assert_allclose(np.asarray(out["w"]), np.asarray(w), rtol=0, atol=0)
    np.testing.assert_allclose(np.asarray(out["b"]), np.asarray(b), rtol=0, atol=0)

    # indexing() (equivalent to PyTorch val[inds].clone()) -- small-table path
    inds = jnp.array([0, 2, 3], dtype=jnp.int32)
    td_sub = td.indexing(inds)
    out_sub = td_sub()
    jax.block_until_ready(out_sub)
    np.testing.assert_allclose(np.asarray(out_sub["x"]), np.asarray(x[inds]), rtol=0, atol=0)
    np.testing.assert_allclose(np.asarray(out_sub["w"]), np.asarray(w[inds]), rtol=0, atol=0)
    np.testing.assert_allclose(np.asarray(out_sub["b"]), np.asarray(b[inds]), rtol=0, atol=0)

    # Exercise the large-table DMA-gather path (force it with a tiny budget),
    # including a partial final row block and feature-dim tiling (384 = 3*128).
    big = jax.random.normal(k4, (256, 384), dtype=jnp.float32)
    big_inds = jnp.array([3, 7, 255, 0, 128, 17, 200, 64, 1, 2, 100, 250, 31],
                         dtype=jnp.int32)
    big_out = pallas_index_rows(big, big_inds, small_table_bytes=0, d_tile=128)
    jax.block_until_ready(big_out)
    np.testing.assert_allclose(np.asarray(big_out), np.asarray(big[big_inds]),
                               rtol=0, atol=0)

    print("KERNEL_OK")
</pallas_src>

<mosaic_0001>
module attributes {stable_mosaic.version = 11 : i64} {
  func.func @kernel(%arg0: memref<4x2x16x16xf32, #tpu.memory_space<any>>, %arg1: memref<4x32xf32, #tpu.memory_space<any>>, %arg2: memref<4x8x8xf32, #tpu.memory_space<any>>, %arg3: memref<4x2x16x16xf32, #tpu.memory_space<any>>, %arg4: memref<4x32xf32, #tpu.memory_space<any>>, %arg5: memref<4x8x8xf32, #tpu.memory_space<any>>, %arg6: memref<3x!tpu.dma_semaphore, #tpu.memory_space<semaphore_mem>>) attributes {dimension_semantics = [], scalar_prefetch = 0 : i64, scratch_operands = 1 : i64, tpu.core_type = #tpu.core_type<tc>} {
    %c0_i32 = arith.constant 0 : i32
    %0 = tpu.memref_slice %arg6[%c0_i32] : memref<3x!tpu.dma_semaphore, #tpu.memory_space<semaphore_mem>> -> memref<1x!tpu.dma_semaphore, #tpu.memory_space<semaphore_mem>>
    %1 = tpu.memref_squeeze %0 : memref<1x!tpu.dma_semaphore, #tpu.memory_space<semaphore_mem>> -> memref<!tpu.dma_semaphore, #tpu.memory_space<semaphore_mem>>
    tpu.enqueue_dma source(%arg0 : memref<4x2x16x16xf32, #tpu.memory_space<any>>) target(%arg3 : memref<4x2x16x16xf32, #tpu.memory_space<any>>) target_semaphore(%1 : memref<!tpu.dma_semaphore, #tpu.memory_space<semaphore_mem>>)
    %c1_i32 = arith.constant 1 : i32
    %2 = tpu.memref_slice %arg6[%c1_i32] : memref<3x!tpu.dma_semaphore, #tpu.memory_space<semaphore_mem>> -> memref<1x!tpu.dma_semaphore, #tpu.memory_space<semaphore_mem>>
    %3 = tpu.memref_squeeze %2 : memref<1x!tpu.dma_semaphore, #tpu.memory_space<semaphore_mem>> -> memref<!tpu.dma_semaphore, #tpu.memory_space<semaphore_mem>>
    tpu.enqueue_dma source(%arg1 : memref<4x32xf32, #tpu.memory_space<any>>) target(%arg4 : memref<4x32xf32, #tpu.memory_space<any>>) target_semaphore(%3 : memref<!tpu.dma_semaphore, #tpu.memory_space<semaphore_mem>>)
    %c2_i32 = arith.constant 2 : i32
    %4 = tpu.memref_slice %arg6[%c2_i32] : memref<3x!tpu.dma_semaphore, #tpu.memory_space<semaphore_mem>> -> memref<1x!tpu.dma_semaphore, #tpu.memory_space<semaphore_mem>>
    %5 = tpu.memref_squeeze %4 : memref<1x!tpu.dma_semaphore, #tpu.memory_space<semaphore_mem>> -> memref<!tpu.dma_semaphore, #tpu.memory_space<semaphore_mem>>
    tpu.enqueue_dma source(%arg2 : memref<4x8x8xf32, #tpu.memory_space<any>>) target(%arg5 : memref<4x8x8xf32, #tpu.memory_space<any>>) target_semaphore(%5 : memref<!tpu.dma_semaphore, #tpu.memory_space<semaphore_mem>>)
    %c0_i32_0 = arith.constant 0 : i32
    %6 = tpu.memref_slice %arg6[%c0_i32_0] : memref<3x!tpu.dma_semaphore, #tpu.memory_space<semaphore_mem>> -> memref<1x!tpu.dma_semaphore, #tpu.memory_space<semaphore_mem>>
    %7 = tpu.memref_squeeze %6 : memref<1x!tpu.dma_semaphore, #tpu.memory_space<semaphore_mem>> -> memref<!tpu.dma_semaphore, #tpu.memory_space<semaphore_mem>>
    tpu.wait_dma2 semaphore(%7 : memref<!tpu.dma_semaphore, #tpu.memory_space<semaphore_mem>>) src(%arg0 : memref<4x2x16x16xf32, #tpu.memory_space<any>>) dst(%arg3 : memref<4x2x16x16xf32, #tpu.memory_space<any>>)
    %c1_i32_1 = arith.constant 1 : i32
    %8 = tpu.memref_slice %arg6[%c1_i32_1] : memref<3x!tpu.dma_semaphore, #tpu.memory_space<semaphore_mem>> -> memref<1x!tpu.dma_semaphore, #tpu.memory_space<semaphore_mem>>
    %9 = tpu.memref_squeeze %8 : memref<1x!tpu.dma_semaphore, #tpu.memory_space<semaphore_mem>> -> memref<!tpu.dma_semaphore, #tpu.memory_space<semaphore_mem>>
    tpu.wait_dma2 semaphore(%9 : memref<!tpu.dma_semaphore, #tpu.memory_space<semaphore_mem>>) src(%arg1 : memref<4x32xf32, #tpu.memory_space<any>>) dst(%arg4 : memref<4x32xf32, #tpu.memory_space<any>>)
    %c2_i32_2 = arith.constant 2 : i32
    %10 = tpu.memref_slice %arg6[%c2_i32_2] : memref<3x!tpu.dma_semaphore, #tpu.memory_space<semaphore_mem>> -> memref<1x!tpu.dma_semaphore, #tpu.memory_space<semaphore_mem>>
    %11 = tpu.memref_squeeze %10 : memref<1x!tpu.dma_semaphore, #tpu.memory_space<semaphore_mem>> -> memref<!tpu.dma_semaphore, #tpu.memory_space<semaphore_mem>>
    tpu.wait_dma2 semaphore(%11 : memref<!tpu.dma_semaphore, #tpu.memory_space<semaphore_mem>>) src(%arg2 : memref<4x8x8xf32, #tpu.memory_space<any>>) dst(%arg5 : memref<4x8x8xf32, #tpu.memory_space<any>>)
    return
  }
}

</mosaic_0001>

<bundles_post_ra>
// kernel: tpu_custom_call.1
= control target key start
LH: loop header
LB: loop body
LE: loop exit
PB: predicated region body
PF: predicated region fallthrough
CT: control target
= control target key end

     0   :  { %s94_s27 = smov [#allocation2]   ;;  %s95_s28 = smov [#allocation3]   ;;  %s149_s0 = inlined_call_operand.hbm [shape: f32[4,2,16,16], index: 0, kind: input, shape index: {}]   ;;  %s150_s3 = inlined_call_operand.hbm [shape: f32[4,2,16,16], index: 3, kind: output, shape index: {0}]   ;;  %s151_s1 = inlined_call_operand.hbm [shape: f32[4,32], index: 1, kind: input, shape index: {}]   ;;  %s152_s4 = inlined_call_operand.hbm [shape: f32[4,32], index: 4, kind: output, shape index: {1}]   ;;  %s153_s2 = inlined_call_operand.hbm [shape: f32[4,8,8], index: 2, kind: input, shape index: {}]   ;;  %s154_s5 = inlined_call_operand.hbm [shape: f32[4,8,8], index: 5, kind: output, shape index: {2}]  }
   0x1   :  { %s15_s20 = sshll.u32 %s149_s0, 4  ;;  %s17_s23 = sshll.u32 %s150_s3, 4  ;;  %s16_s20 = int_to_ptr.hbm [resolvable:$true] %s15_s20  ;;  %s18_s23 = int_to_ptr.hbm [resolvable:$true] %s17_s23 }
   0x2   :  { %s27_s26 = sshll.u32 %s151_s1, 4  ;;  %s96_s29 = smov 0   ;;  %s28_s26 = int_to_ptr.hbm [resolvable:$true] %s27_s26 }
   0x3   :  { %21 = dma.general %s16_s20, 2048, %s18_s23, %s94_s27, %s95_s28, [#allocation4], %s96_s29, 0  }
   0x4   :  { %s29_s7 = sshll.u32 %s152_s4, 4  ;;  %s39_s3 = sshll.u32 %s153_s2, 4  ;;  %s30_s7 = int_to_ptr.hbm [resolvable:$true] %s29_s7  ;;  %s40_s3 = int_to_ptr.hbm [resolvable:$true] %s39_s3 }
   0x5   :  { %s97_s9 = smov [#allocation2 + $0x1]   ;;  %s98_s10 = smov [#allocation5]  }
   0x6   :  { %33 = dma.general %s28_s26, 64, %s30_s7, %s97_s9, %s98_s10, [#allocation6], %s96_s29, 0  }
   0x7   :  { %s41_s12 = sshll.u32 %s154_s5, 4  ;;  %s99_s13 = smov [#allocation2 + $0x2]   ;;  %s42_s12 = int_to_ptr.hbm [resolvable:$true] %s41_s12 }
   0x8   :  { %s100_s14 = smov [#allocation7]  }
   0x9   :  { %45 = dma.general %s40_s3, 512, %s42_s12, %s99_s13, %s100_s14, [#allocation8], %s96_s29, 0  }
   0xa   :  { %88 = dma.done.wait [#allocation2], 2048 }
   0xb   :  { %89 = vsyncadd [#allocation2], 4294965248 }
   0xc   :  { %90 = dma.done.wait [#allocation2 + $0x1], 64 }
   0xd   :  { %91 = vsyncadd [#allocation2 + $0x1], 4294967232 }
   0xe   :  { %92 = dma.done.wait [#allocation2 + $0x2], 512 }
   0xf   :  { %93 = vsyncadd [#allocation2 + $0x2], 4294966784 }
  0x10   :  { %58 = vsyncmov [#allocation2] }
  0x13   :  { %s59_s2 = vpop.sfrf %58 }
  0x14   :  { %p78_p0 = scmp.ne.s32.totalorder %s59_s2, 0 }
  0x16   :  { %63 = shalt.err (%p78_p0)  }
  0x17   :  { %65 = vsyncmov [#allocation2 + $0x1] }
  0x1a   :  { %s66_s4 = vpop.sfrf %65 }
  0x1b   :  { %p79_p1 = scmp.ne.s32.totalorder %s66_s4, 0 }
  0x1d   :  { %70 = shalt.err (%p79_p1)  }
  0x1e   :  { %72 = vsyncmov [#allocation2 + $0x2] }
  0x21   :  { %s73_s5 = vpop.sfrf %72 }
  0x22   :  { %p80_p2 = scmp.ne.s32.totalorder %s73_s5, 0 }
  0x24   :  { %77 = shalt.err (%p80_p2)  }

</bundles_post_ra>
